<compile_context>
chip_gen: v7x
topology: tpu7x:2x2x1
jax: 0.10.0
libtpu: 0.0.40
codegen_flags: <defaults>
</compile_context>

<pallas_src>
import functools

import jax
import jax.numpy as jnp
from jax.experimental import pallas as pl
from jax.experimental.pallas import tpu as pltpu


def _round_up(x, m):
    return ((x + m - 1) // m) * m


def _pad_last(x, hp):
    h = x.shape[-1]
    if h == hp:
        return x
    return jnp.pad(x, ((0, 0),) * (x.ndim - 1) + ((0, hp - h),))


def _sum_embed(table, idx, chunk=64):
    """sum_w table[idx[..., w]] -> (B, S, Hp) with a bounded (B,S,chunk,Hp) transient."""
    B, S, W = idx.shape
    out = jnp.zeros((B, S, table.shape[1]), table.dtype)
    for w0 in range(0, W, chunk):
        out = out + jnp.take(table, idx[:, :, w0:w0 + chunk], axis=0).sum(axis=2)
    return out


def wordkvmn_kernel(hidden_ref, emb_at_ref, mask_ref, label_ref, de_ref, wc_ref,
                    out_ref, *, num_labels):
    """One (batch b, S-tile) grid step.

    hidden_ref : (tS, Hp) f32    char hidden states (residual + matmul lhs)
    emb_at_ref : (Hp, Wp) bf16   word embeddings, pre-scaled by 1/temper and
                                 pre-transposed so K (=Hp) is on the sublane axis
    mask_ref   : (tS, Wp) bf16   clamped word mask
    label_ref  : (tS, Wp) i32    label_value_matrix
    de_ref     : (tS, Hp) f32    precomputed sum_w (W_d[freq] + W_e[avfreq])
    wc_ref     : (Lp, Hp) f32    label embedding table zero-padded to Lp rows
    out_ref    : (tS, Hp) f32
    """
    hidden = hidden_ref[...]                                    # (tS, Hp) f32
    tS = hidden.shape[0]
    Lp = wc_ref.shape[0]

    # u = hidden @ emb_a^T / temper : bf16 operands, f32 accumulation on the
    # MXU; the 1/temper scale is folded into emb_at on the host.
    u = jax.lax.dot_general(
        hidden.astype(jnp.bfloat16), emb_at_ref[...],
        dimension_numbers=(((1,), (0,)), ((), ())),
        preferred_element_type=jnp.float32)                     # (tS, Wp)

    # Masked, max-stabilized exponentiation over the word axis.  Padded W
    # columns have mask == 0 (and u == 0), so they contribute nothing.
    mask = mask_ref[...].astype(jnp.float32)                    # (tS, Wp)
    label = label_ref[...]                                      # (tS, Wp) i32
    m = jnp.max(u, axis=-1, keepdims=True)                      # (tS, 1)  XLU
    delta = jnp.exp(u - m) * mask                               # EUP exp
    denom = jnp.sum(delta, axis=-1, keepdims=True) + 1e-10      # XLU reduce
    inv_denom = pl.reciprocal(denom, approx=True)               # EUP recip

    # Per-label bucket sums of the UNNORMALIZED delta, placed into Lp lanes,
    # then one normalization multiply and ONE MXU matmul against W_c.  This
    # replaces the former 10 rank-1 (tS, Hp) accumulation passes and never
    # materializes p over (tS, Wp).
    lane_ids = jax.lax.broadcasted_iota(jnp.int32, (tS, Lp), 1)
    buckets = jnp.zeros((tS, Lp), jnp.float32)
    for l in range(num_labels):                                 # L == 10, unrolled
        s_l = jnp.sum(jnp.where(label == l, delta, 0.0),
                      axis=-1, keepdims=True)                   # (tS, 1)
        buckets = buckets + jnp.where(lane_ids == l, s_l, 0.0)
    buckets = buckets * inv_denom                               # (tS, Lp), tiny

    lab = jnp.dot(buckets, wc_ref[...],
                  preferred_element_type=jnp.float32)           # (tS, Hp) MXU

    out_ref[...] = (hidden + de_ref[...] + lab).astype(out_ref.dtype)


def wordkvmn_forward(word_seq, hidden_state, label_value_matrix,
                     word_mask_metrix, freq, avfreq,
                     W_a, W_c, W_d, W_e):
    """Full WordKVMN forward: gathers / precompute in XLA glue, hot path in Pallas."""
    B, S, H = hidden_state.shape
    W = word_seq.shape[1]
    L = W_c.shape[0]
    temper = float(H) ** 0.5
    f32 = jnp.float32

    # Lane/sublane friendly padded sizes.
    Hp = _round_up(H, 128)        # lane-dense loads / unmasked vst stores
    Wp = _round_up(W, 128)
    Lp = 128                      # pad the label table so the bucket matmul K is a full lane tile

    # --- S tiling from a VMEM budget (v7x: 64 MiB per TC; leave headroom) ---
    def _vmem_estimate(ts):
        streamed = 3 * ts * Hp * 4          # hidden, de, out (f32)
        streamed += ts * Wp * (4 + 2)       # label (i32) + mask (bf16)
        streamed += Hp * Wp * 2             # emb_a^T (bf16)
        resident = Lp * Hp * 4              # W_c table
        temps = 3 * ts * Wp * 4 + 2 * ts * Lp * 4 + ts * Hp * 4   # u/delta, buckets, lab
        return 2 * (streamed + resident) + temps   # x2: double-buffering

    budget = 24 * 1024 * 1024
    ts_cap = 512
    while ts_cap > 16 and _vmem_estimate(ts_cap) > budget:
        ts_cap -= 16

    # Minimize S padding; when B == 1 make sure there are >=2 grid steps so
    # both v7x TensorCores get work (no effect on single-TC v5e/v6e).
    # TODO(synk): when B*S is very small, fold several batch rows into one
    # grid step so the (tS, Hp) x (Hp, Wp) matmul keeps the MXU occupied.
    min_steps = 2 if (B == 1 and S > 16) else 1
    n_s = max(pl.cdiv(S, ts_cap), min_steps)
    tS = _round_up(pl.cdiv(S, n_s), 16)     # multiple of 16: bf16-safe sublanes
    n_s = pl.cdiv(S, tS)
    Sp = n_s * tS
    vmem_limit = int(min(max(2 * _vmem_estimate(tS), 16 << 20), 56 << 20))

    # --- XLA glue -----------------------------------------------------------
    W_a_p = _pad_last(W_a.astype(f32), Hp)
    W_c_p = jnp.pad(_pad_last(W_c.astype(f32), Hp), ((0, Lp - L), (0, 0)))
    W_d_p = _pad_last(W_d.astype(f32), Hp)
    W_e_p = _pad_last(W_e.astype(f32), Hp)

    # (1) attention-logit word embeddings: pre-scaled by 1/temper, transposed
    #     to (B, Hp, Wp) so the MXU contraction K (=Hp) sits on the RHS
    #     sublane axis (no per-step XLU transpose), cast to bf16.
    emb_a = jnp.take(W_a_p, word_seq, axis=0) * (1.0 / temper)      # (B, W, Hp)
    emb_a_t = jnp.transpose(emb_a, (0, 2, 1))                       # (B, Hp, W)
    emb_a_t = jnp.pad(emb_a_t,
                      ((0, 0), (0, 0), (0, Wp - W))).astype(jnp.bfloat16)

    # (2) sum_w (W_d[freq] + W_e[avfreq]) collapses to (B, S, Hp): chunked
    #     gather-and-sum, independent of the attention weights, so the
    #     (B, S, W, H) tensors are never streamed through the kernel.
    de = _sum_embed(W_d_p, freq) + _sum_embed(W_e_p, avfreq)        # (B, S, Hp)

    # (3) zero-pad the per-(b, s) streams.  Zero padding is exact: padded H
    #     columns stay 0, padded W slots have mask 0 so they contribute 0,
    #     padded S rows are sliced off at the end.
    #     Mask is clamped on the host and streamed as bf16 (exact for 0/1
    #     masks; <=2^-9 relative error for fractional masks).
    # TODO(synk): label_value_matrix could be streamed as int8 (L == 10 fits)
    # for another bandwidth cut on v5e once int8 tiling at these tile sizes is
    # validated.
    hidden_p = jnp.pad(hidden_state.astype(f32),
                       ((0, 0), (0, Sp - S), (0, Hp - H)))
    de_p = jnp.pad(de.astype(f32), ((0, 0), (0, Sp - S), (0, 0)))
    mask_p = jnp.pad(jnp.clip(word_mask_metrix.astype(f32), 0.0, 1.0),
                     ((0, 0), (0, Sp - S), (0, Wp - W))).astype(jnp.bfloat16)
    label_p = jnp.pad(label_value_matrix.astype(jnp.int32),
                      ((0, 0), (0, Sp - S), (0, Wp - W)))

    kernel = functools.partial(wordkvmn_kernel, num_labels=L)

    out = pl.pallas_call(
        kernel,
        out_shape=jax.ShapeDtypeStruct((B, Sp, Hp), f32),
        grid=(B, n_s),
        in_specs=[
            pl.BlockSpec((None, tS, Hp), lambda b, s: (b, s, 0)),   # hidden (f32)
            pl.BlockSpec((None, Hp, Wp), lambda b, s: (b, 0, 0)),   # emb_a^T (bf16)
            pl.BlockSpec((None, tS, Wp), lambda b, s: (b, s, 0)),   # mask (bf16)
            pl.BlockSpec((None, tS, Wp), lambda b, s: (b, s, 0)),   # labels (i32)
            pl.BlockSpec((None, tS, Hp), lambda b, s: (b, s, 0)),   # sum_w(d+e) (f32)
            pl.BlockSpec((Lp, Hp), lambda b, s: (0, 0)),            # W_c table (f32)
        ],
        out_specs=pl.BlockSpec((None, tS, Hp), lambda b, s: (b, s, 0)),
        compiler_params=pltpu.CompilerParams(
            dimension_semantics=("parallel", "parallel"),
            vmem_limit_bytes=vmem_limit),
    )(hidden_p, emb_a_t, mask_p, label_p, de_p, W_c_p)

    return out[:, :S, :H]


def wordkvmn_reference(word_seq, hidden_state, label_value_matrix,
                       word_mask_metrix, freq, avfreq,
                       W_a, W_c, W_d, W_e):
    """Pure-JAX f32 reference matching the PyTorch forward semantics."""
    H = hidden_state.shape[-1]
    temper = float(H) ** 0.5
    emb_a = W_a[word_seq]                 # (B, W, H)
    emb_c = W_c[label_value_matrix]       # (B, S, W, H)
    emb_d = W_d[freq]
    emb_e = W_e[avfreq]
    u = jnp.einsum('bsh,bwh->bsw', hidden_state, emb_a) / temper
    tmp_mask = jnp.clip(word_mask_metrix, 0.0, 1.0)
    exp_u = jnp.exp(u)
    delta = exp_u * tmp_mask
    sum_delta = jnp.sum(delta, axis=2, keepdims=True)
    p = delta / (sum_delta + 1e-10)
    o = p[..., None] * emb_c + emb_d + emb_e   # (B, S, W, H)
    o = jnp.sum(o, axis=2)                     # (B, S, H)
    return o + hidden_state


if __name__ == "__main__":
    # Small, deterministic example shapes consistent with the module.
    B, S, W, H = 2, 8, 8, 32      # batch, char-seq len, word-seq len, hidden
    word_size = 50                # vocab size for embeddings a/d/e
    label_size = 10               # vocab size for embedding c

    key = jax.random.PRNGKey(0)
    k = jax.random.split(key, 10)

    # Deterministic "parameters" (embedding tables).
    W_a = jax.random.normal(k[0], (word_size, H), dtype=jnp.float32) * 0.1
    W_c = jax.random.normal(k[1], (label_size, H), dtype=jnp.float32) * 0.1
    W_d = jax.random.normal(k[2], (word_size, H), dtype=jnp.float32) * 0.1
    W_e = jax.random.normal(k[3], (word_size, H), dtype=jnp.float32) * 0.1

    # Inputs.
    word_seq = jax.random.randint(k[4], (B, W), 0, word_size, dtype=jnp.int32)
    hidden_state = jax.random.normal(k[5], (B, S, H), dtype=jnp.float32)
    label_value_matrix = jax.random.randint(k[6], (B, S, W), 0, label_size,
                                            dtype=jnp.int32)
    # values outside [0,1] exercise the clamp
    word_mask_metrix = jax.random.randint(k[7], (B, S, W), 0, 3).astype(jnp.float32)
    freq = jax.random.randint(k[8], (B, S, W), 0, word_size, dtype=jnp.int32)
    avfreq = jax.random.randint(k[9], (B, S, W), 0, word_size, dtype=jnp.int32)

    out = wordkvmn_forward(word_seq, hidden_state, label_value_matrix,
                           word_mask_metrix, freq, avfreq,
                           W_a, W_c, W_d, W_e)
    out = jax.block_until_ready(out)

    ref = wordkvmn_reference(word_seq, hidden_state, label_value_matrix,
                             word_mask_metrix, freq, avfreq,
                             W_a, W_c, W_d, W_e)
    ref = jax.block_until_ready(ref)

    assert out.shape == (B, S, H)
    # 2e-2 tolerance: bf16 MXU operands / mask + approx reciprocal (see header).
    assert jnp.allclose(out, ref, rtol=2e-2, atol=2e-2), (
        f"max abs diff {jnp.max(jnp.abs(out - ref))}")

    print("KERNEL_OK")
</pallas_src>

<mosaic_0001>
module attributes {stable_mosaic.version = 11 : i64} {
  func.func @wordkvmn_kernel(%arg0: i32, %arg1: i32, %arg2: memref<1x16x128xf32, #tpu.memory_space<vmem>>, %arg3: memref<1x128x128xbf16, #tpu.memory_space<vmem>>, %arg4: memref<1x16x128xbf16, #tpu.memory_space<vmem>>, %arg5: memref<1x16x128xi32, #tpu.memory_space<vmem>>, %arg6: memref<1x16x128xf32, #tpu.memory_space<vmem>>, %arg7: memref<128x128xf32, #tpu.memory_space<vmem>>, %arg8: memref<1x16x128xf32, #tpu.memory_space<vmem>>) attributes {dimension_semantics = [#tpu.dimension_semantics<parallel>, #tpu.dimension_semantics<parallel>], iteration_bounds = array<i64: 2, 1>, scalar_prefetch = 0 : i64, scratch_operands = 0 : i64, tpu.core_type = #tpu.core_type<tc>, window_params = [{transform_indices = @transform_0, window_bounds = array<i64: 1, 16, 128>}, {transform_indices = @transform_1, window_bounds = array<i64: 1, 128, 128>}, {transform_indices = @transform_2, window_bounds = array<i64: 1, 16, 128>}, {transform_indices = @transform_3, window_bounds = array<i64: 1, 16, 128>}, {transform_indices = @transform_4, window_bounds = array<i64: 1, 16, 128>}, {pipeline_mode = #tpu.pipeline_mode<synchronous>, transform_indices = @transform_5, window_bounds = array<i64: 128, 128>}, {transform_indices = @transform_6, window_bounds = array<i64: 1, 16, 128>}]} {
    %c0 = arith.constant 0 : index
    %c0_0 = arith.constant 0 : index
    %c0_1 = arith.constant 0 : index
    %0 = vector.load %arg2[%c0, %c0_0, %c0_1] : memref<1x16x128xf32, #tpu.memory_space<vmem>>, vector<1x16x128xf32>
    %1 = vector.shape_cast %0 : vector<1x16x128xf32> to vector<16x128xf32>
    %2 = arith.truncf %1 : vector<16x128xf32> to vector<16x128xbf16>
    %c0_2 = arith.constant 0 : index
    %c0_3 = arith.constant 0 : index
    %c0_4 = arith.constant 0 : index
    %3 = vector.load %arg3[%c0_2, %c0_3, %c0_4] : memref<1x128x128xbf16, #tpu.memory_space<vmem>>, vector<1x128x128xbf16>
    %4 = vector.shape_cast %3 : vector<1x128x128xbf16> to vector<128x128xbf16>
    %cst = arith.constant dense<0.000000e+00> : vector<16x128xf32>
    %5 = tpu.matmul %2, %4, %cst {dimension_numbers = #tpu.dot_dimension_numbers<[1], [0], [0], [1], [0, 0, 1, 1], [], []>} : vector<16x128xbf16>, vector<128x128xbf16>, vector<16x128xf32> -> vector<16x128xf32>
    %c0_5 = arith.constant 0 : index
    %c0_6 = arith.constant 0 : index
    %c0_7 = arith.constant 0 : index
    %6 = vector.load %arg4[%c0_5, %c0_6, %c0_7] : memref<1x16x128xbf16, #tpu.memory_space<vmem>>, vector<1x16x128xbf16>
    %7 = vector.shape_cast %6 : vector<1x16x128xbf16> to vector<16x128xbf16>
    %8 = arith.extf %7 : vector<16x128xbf16> to vector<16x128xf32>
    %c0_8 = arith.constant 0 : index
    %c0_9 = arith.constant 0 : index
    %c0_10 = arith.constant 0 : index
    %9 = vector.load %arg5[%c0_8, %c0_9, %c0_10] : memref<1x16x128xi32, #tpu.memory_space<vmem>>, vector<1x16x128xi32>
    %10 = vector.shape_cast %9 : vector<1x16x128xi32> to vector<16x128xi32>
    %cst_11 = arith.constant dense<0xFF800000> : vector<16xf32>
    %11 = vector.multi_reduction <maximumf>, %5, %cst_11 [1] : vector<16x128xf32> to vector<16xf32>
    %12 = vector.shape_cast %11 : vector<16xf32> to vector<16x1xf32>
    %13 = vector.broadcast %12 : vector<16x1xf32> to vector<16x128xf32>
    %14 = arith.subf %5, %13 : vector<16x128xf32>
    %15 = math.exp %14 : vector<16x128xf32>
    %16 = arith.mulf %15, %8 : vector<16x128xf32>
    %cst_12 = arith.constant dense<0.000000e+00> : vector<16xf32>
    %17 = vector.multi_reduction <add>, %16, %cst_12 [1] : vector<16x128xf32> to vector<16xf32>
    %18 = vector.shape_cast %17 : vector<16xf32> to vector<16x1xf32>
    %cst_13 = arith.constant 1.000000e-10 : f32
    %19 = vector.broadcast %cst_13 : f32 to vector<16x1xf32>
    %20 = arith.addf %18, %19 : vector<16x1xf32>
    %21 = tpu.reciprocal %20 {approx = true} : vector<16x1xf32> -> vector<16x1xf32>
    %22 = tpu.iota {dimensions = array<i32: 1>} : vector<16x128xi32>
    %cst_14 = arith.constant 0.000000e+00 : f32
    %23 = vector.broadcast %cst_14 : f32 to vector<16x128xf32>
    %c0_i32 = arith.constant 0 : i32
    %24 = vector.broadcast %c0_i32 : i32 to vector<16x128xi32>
    %25 = arith.cmpi eq, %10, %24 : vector<16x128xi32>
    %cst_15 = arith.constant 0.000000e+00 : f32
    %26 = vector.broadcast %cst_15 : f32 to vector<16x128xf32>
    %27 = arith.select %25, %16, %26 : vector<16x128xi1>, vector<16x128xf32>
    %cst_16 = arith.constant dense<0.000000e+00> : vector<16xf32>
    %28 = vector.multi_reduction <add>, %27, %cst_16 [1] : vector<16x128xf32> to vector<16xf32>
    %29 = vector.shape_cast %28 : vector<16xf32> to vector<16x1xf32>
    %c0_i32_17 = arith.constant 0 : i32
    %30 = vector.broadcast %c0_i32_17 : i32 to vector<16x128xi32>
    %31 = arith.cmpi eq, %22, %30 : vector<16x128xi32>
    %cst_18 = arith.constant 0.000000e+00 : f32
    %32 = vector.shape_cast %29 : vector<16x1xf32> to vector<16x1xf32>
    %33 = vector.broadcast %32 : vector<16x1xf32> to vector<16x128xf32>
    %34 = vector.broadcast %cst_18 : f32 to vector<16x128xf32>
    %35 = arith.select %31, %33, %34 : vector<16x128xi1>, vector<16x128xf32>
    %36 = arith.addf %23, %35 : vector<16x128xf32>
    %c1_i32 = arith.constant 1 : i32
    %37 = vector.broadcast %c1_i32 : i32 to vector<16x128xi32>
    %38 = arith.cmpi eq, %10, %37 : vector<16x128xi32>
    %cst_19 = arith.constant 0.000000e+00 : f32
    %39 = vector.broadcast %cst_19 : f32 to vector<16x128xf32>
    %40 = arith.select %38, %16, %39 : vector<16x128xi1>, vector<16x128xf32>
    %cst_20 = arith.constant dense<0.000000e+00> : vector<16xf32>
    %41 = vector.multi_reduction <add>, %40, %cst_20 [1] : vector<16x128xf32> to vector<16xf32>
    %42 = vector.shape_cast %41 : vector<16xf32> to vector<16x1xf32>
    %c1_i32_21 = arith.constant 1 : i32
    %43 = vector.broadcast %c1_i32_21 : i32 to vector<16x128xi32>
    %44 = arith.cmpi eq, %22, %43 : vector<16x128xi32>
    %cst_22 = arith.constant 0.000000e+00 : f32
    %45 = vector.shape_cast %42 : vector<16x1xf32> to vector<16x1xf32>
    %46 = vector.broadcast %45 : vector<16x1xf32> to vector<16x128xf32>
    %47 = vector.broadcast %cst_22 : f32 to vector<16x128xf32>
    %48 = arith.select %44, %46, %47 : vector<16x128xi1>, vector<16x128xf32>
    %49 = arith.addf %36, %48 : vector<16x128xf32>
    %c2_i32 = arith.constant 2 : i32
    %50 = vector.broadcast %c2_i32 : i32 to vector<16x128xi32>
    %51 = arith.cmpi eq, %10, %50 : vector<16x128xi32>
    %cst_23 = arith.constant 0.000000e+00 : f32
    %52 = vector.broadcast %cst_23 : f32 to vector<16x128xf32>
    %53 = arith.select %51, %16, %52 : vector<16x128xi1>, vector<16x128xf32>
    %cst_24 = arith.constant dense<0.000000e+00> : vector<16xf32>
    %54 = vector.multi_reduction <add>, %53, %cst_24 [1] : vector<16x128xf32> to vector<16xf32>
    %55 = vector.shape_cast %54 : vector<16xf32> to vector<16x1xf32>
    %c2_i32_25 = arith.constant 2 : i32
    %56 = vector.broadcast %c2_i32_25 : i32 to vector<16x128xi32>
    %57 = arith.cmpi eq, %22, %56 : vector<16x128xi32>
    %cst_26 = arith.constant 0.000000e+00 : f32
    %58 = vector.shape_cast %55 : vector<16x1xf32> to vector<16x1xf32>
    %59 = vector.broadcast %58 : vector<16x1xf32> to vector<16x128xf32>
    %60 = vector.broadcast %cst_26 : f32 to vector<16x128xf32>
    %61 = arith.select %57, %59, %60 : vector<16x128xi1>, vector<16x128xf32>
    %62 = arith.addf %49, %61 : vector<16x128xf32>
    %c3_i32 = arith.constant 3 : i32
    %63 = vector.broadcast %c3_i32 : i32 to vector<16x128xi32>
    %64 = arith.cmpi eq, %10, %63 : vector<16x128xi32>
    %cst_27 = arith.constant 0.000000e+00 : f32
    %65 = vector.broadcast %cst_27 : f32 to vector<16x128xf32>
    %66 = arith.select %64, %16, %65 : vector<16x128xi1>, vector<16x128xf32>
    %cst_28 = arith.constant dense<0.000000e+00> : vector<16xf32>
    %67 = vector.multi_reduction <add>, %66, %cst_28 [1] : vector<16x128xf32> to vector<16xf32>
    %68 = vector.shape_cast %67 : vector<16xf32> to vector<16x1xf32>
    %c3_i32_29 = arith.constant 3 : i32
    %69 = vector.broadcast %c3_i32_29 : i32 to vector<16x128xi32>
    %70 = arith.cmpi eq, %22, %69 : vector<16x128xi32>
    %cst_30 = arith.constant 0.000000e+00 : f32
    %71 = vector.shape_cast %68 : vector<16x1xf32> to vector<16x1xf32>
    %72 = vector.broadcast %71 : vector<16x1xf32> to vector<16x128xf32>
    %73 = vector.broadcast %cst_30 : f32 to vector<16x128xf32>
    %74 = arith.select %70, %72, %73 : vector<16x128xi1>, vector<16x128xf32>
    %75 = arith.addf %62, %74 : vector<16x128xf32>
    %c4_i32 = arith.constant 4 : i32
    %76 = vector.broadcast %c4_i32 : i32 to vector<16x128xi32>
    %77 = arith.cmpi eq, %10, %76 : vector<16x128xi32>
    %cst_31 = arith.constant 0.000000e+00 : f32
    %78 = vector.broadcast %cst_31 : f32 to vector<16x128xf32>
    %79 = arith.select %77, %16, %78 : vector<16x128xi1>, vector<16x128xf32>
    %cst_32 = arith.constant dense<0.000000e+00> : vector<16xf32>
    %80 = vector.multi_reduction <add>, %79, %cst_32 [1] : vector<16x128xf32> to vector<16xf32>
    %81 = vector.shape_cast %80 : vector<16xf32> to vector<16x1xf32>
    %c4_i32_33 = arith.constant 4 : i32
    %82 = vector.broadcast %c4_i32_33 : i32 to vector<16x128xi32>
    %83 = arith.cmpi eq, %22, %82 : vector<16x128xi32>
    %cst_34 = arith.constant 0.000000e+00 : f32
    %84 = vector.shape_cast %81 : vector<16x1xf32> to vector<16x1xf32>
    %85 = vector.broadcast %84 : vector<16x1xf32> to vector<16x128xf32>
    %86 = vector.broadcast %cst_34 : f32 to vector<16x128xf32>
    %87 = arith.select %83, %85, %86 : vector<16x128xi1>, vector<16x128xf32>
    %88 = arith.addf %75, %87 : vector<16x128xf32>
    %c5_i32 = arith.constant 5 : i32
    %89 = vector.broadcast %c5_i32 : i32 to vector<16x128xi32>
    %90 = arith.cmpi eq, %10, %89 : vector<16x128xi32>
    %cst_35 = arith.constant 0.000000e+00 : f32
    %91 = vector.broadcast %cst_35 : f32 to vector<16x128xf32>
    %92 = arith.select %90, %16, %91 : vector<16x128xi1>, vector<16x128xf32>
    %cst_36 = arith.constant dense<0.000000e+00> : vector<16xf32>
    %93 = vector.multi_reduction <add>, %92, %cst_36 [1] : vector<16x128xf32> to vector<16xf32>
    %94 = vector.shape_cast %93 : vector<16xf32> to vector<16x1xf32>
    %c5_i32_37 = arith.constant 5 : i32
    %95 = vector.broadcast %c5_i32_37 : i32 to vector<16x128xi32>
    %96 = arith.cmpi eq, %22, %95 : vector<16x128xi32>
    %cst_38 = arith.constant 0.000000e+00 : f32
    %97 = vector.shape_cast %94 : vector<16x1xf32> to vector<16x1xf32>
    %98 = vector.broadcast %97 : vector<16x1xf32> to vector<16x128xf32>
    %99 = vector.broadcast %cst_38 : f32 to vector<16x128xf32>
    %100 = arith.select %96, %98, %99 : vector<16x128xi1>, vector<16x128xf32>
    %101 = arith.addf %88, %100 : vector<16x128xf32>
    %c6_i32 = arith.constant 6 : i32
    %102 = vector.broadcast %c6_i32 : i32 to vector<16x128xi32>
    %103 = arith.cmpi eq, %10, %102 : vector<16x128xi32>
    %cst_39 = arith.constant 0.000000e+00 : f32
    %104 = vector.broadcast %cst_39 : f32 to vector<16x128xf32>
    %105 = arith.select %103, %16, %104 : vector<16x128xi1>, vector<16x128xf32>
    %cst_40 = arith.constant dense<0.000000e+00> : vector<16xf32>
    %106 = vector.multi_reduction <add>, %105, %cst_40 [1] : vector<16x128xf32> to vector<16xf32>
    %107 = vector.shape_cast %106 : vector<16xf32> to vector<16x1xf32>
    %c6_i32_41 = arith.constant 6 : i32
    %108 = vector.broadcast %c6_i32_41 : i32 to vector<16x128xi32>
    %109 = arith.cmpi eq, %22, %108 : vector<16x128xi32>
    %cst_42 = arith.constant 0.000000e+00 : f32
    %110 = vector.shape_cast %107 : vector<16x1xf32> to vector<16x1xf32>
    %111 = vector.broadcast %110 : vector<16x1xf32> to vector<16x128xf32>
    %112 = vector.broadcast %cst_42 : f32 to vector<16x128xf32>
    %113 = arith.select %109, %111, %112 : vector<16x128xi1>, vector<16x128xf32>
    %114 = arith.addf %101, %113 : vector<16x128xf32>
    %c7_i32 = arith.constant 7 : i32
    %115 = vector.broadcast %c7_i32 : i32 to vector<16x128xi32>
    %116 = arith.cmpi eq, %10, %115 : vector<16x128xi32>
    %cst_43 = arith.constant 0.000000e+00 : f32
    %117 = vector.broadcast %cst_43 : f32 to vector<16x128xf32>
    %118 = arith.select %116, %16, %117 : vector<16x128xi1>, vector<16x128xf32>
    %cst_44 = arith.constant dense<0.000000e+00> : vector<16xf32>
    %119 = vector.multi_reduction <add>, %118, %cst_44 [1] : vector<16x128xf32> to vector<16xf32>
    %120 = vector.shape_cast %119 : vector<16xf32> to vector<16x1xf32>
    %c7_i32_45 = arith.constant 7 : i32
    %121 = vector.broadcast %c7_i32_45 : i32 to vector<16x128xi32>
    %122 = arith.cmpi eq, %22, %121 : vector<16x128xi32>
    %cst_46 = arith.constant 0.000000e+00 : f32
    %123 = vector.shape_cast %120 : vector<16x1xf32> to vector<16x1xf32>
    %124 = vector.broadcast %123 : vector<16x1xf32> to vector<16x128xf32>
    %125 = vector.broadcast %cst_46 : f32 to vector<16x128xf32>
    %126 = arith.select %122, %124, %125 : vector<16x128xi1>, vector<16x128xf32>
    %127 = arith.addf %114, %126 : vector<16x128xf32>
    %c8_i32 = arith.constant 8 : i32
    %128 = vector.broadcast %c8_i32 : i32 to vector<16x128xi32>
    %129 = arith.cmpi eq, %10, %128 : vector<16x128xi32>
    %cst_47 = arith.constant 0.000000e+00 : f32
    %130 = vector.broadcast %cst_47 : f32 to vector<16x128xf32>
    %131 = arith.select %129, %16, %130 : vector<16x128xi1>, vector<16x128xf32>
    %cst_48 = arith.constant dense<0.000000e+00> : vector<16xf32>
    %132 = vector.multi_reduction <add>, %131, %cst_48 [1] : vector<16x128xf32> to vector<16xf32>
    %133 = vector.shape_cast %132 : vector<16xf32> to vector<16x1xf32>
    %c8_i32_49 = arith.constant 8 : i32
    %134 = vector.broadcast %c8_i32_49 : i32 to vector<16x128xi32>
    %135 = arith.cmpi eq, %22, %134 : vector<16x128xi32>
    %cst_50 = arith.constant 0.000000e+00 : f32
    %136 = vector.shape_cast %133 : vector<16x1xf32> to vector<16x1xf32>
    %137 = vector.broadcast %136 : vector<16x1xf32> to vector<16x128xf32>
    %138 = vector.broadcast %cst_50 : f32 to vector<16x128xf32>
    %139 = arith.select %135, %137, %138 : vector<16x128xi1>, vector<16x128xf32>
    %140 = arith.addf %127, %139 : vector<16x128xf32>
    %c9_i32 = arith.constant 9 : i32
    %141 = vector.broadcast %c9_i32 : i32 to vector<16x128xi32>
    %142 = arith.cmpi eq, %10, %141 : vector<16x128xi32>
    %cst_51 = arith.constant 0.000000e+00 : f32
    %143 = vector.broadcast %cst_51 : f32 to vector<16x128xf32>
    %144 = arith.select %142, %16, %143 : vector<16x128xi1>, vector<16x128xf32>
    %cst_52 = arith.constant dense<0.000000e+00> : vector<16xf32>
    %145 = vector.multi_reduction <add>, %144, %cst_52 [1] : vector<16x128xf32> to vector<16xf32>
    %146 = vector.shape_cast %145 : vector<16xf32> to vector<16x1xf32>
    %c9_i32_53 = arith.constant 9 : i32
    %147 = vector.broadcast %c9_i32_53 : i32 to vector<16x128xi32>
    %148 = arith.cmpi eq, %22, %147 : vector<16x128xi32>
    %cst_54 = arith.constant 0.000000e+00 : f32
    %149 = vector.shape_cast %146 : vector<16x1xf32> to vector<16x1xf32>
    %150 = vector.broadcast %149 : vector<16x1xf32> to vector<16x128xf32>
    %151 = vector.broadcast %cst_54 : f32 to vector<16x128xf32>
    %152 = arith.select %148, %150, %151 : vector<16x128xi1>, vector<16x128xf32>
    %153 = arith.addf %140, %152 : vector<16x128xf32>
    %154 = vector.broadcast %21 : vector<16x1xf32> to vector<16x128xf32>
    %155 = arith.mulf %153, %154 : vector<16x128xf32>
    %c0_55 = arith.constant 0 : index
    %c0_56 = arith.constant 0 : index
    %156 = vector.load %arg7[%c0_55, %c0_56] : memref<128x128xf32, #tpu.memory_space<vmem>>, vector<128x128xf32>
    %cst_57 = arith.constant dense<0.000000e+00> : vector<16x128xf32>
    %157 = tpu.matmul %155, %156, %cst_57 {dimension_numbers = #tpu.dot_dimension_numbers<[1], [0], [0], [1], [0, 0, 1, 1], [], []>} : vector<16x128xf32>, vector<128x128xf32>, vector<16x128xf32> -> vector<16x128xf32>
    %c0_58 = arith.constant 0 : index
    %c0_59 = arith.constant 0 : index
    %c0_60 = arith.constant 0 : index
    %158 = vector.load %arg6[%c0_58, %c0_59, %c0_60] : memref<1x16x128xf32, #tpu.memory_space<vmem>>, vector<1x16x128xf32>
    %159 = vector.shape_cast %158 : vector<1x16x128xf32> to vector<16x128xf32>
    %160 = arith.addf %1, %159 : vector<16x128xf32>
    %161 = arith.addf %160, %157 : vector<16x128xf32>
    %c0_61 = arith.constant 0 : index
    %c0_62 = arith.constant 0 : index
    %c0_63 = arith.constant 0 : index
    %162 = vector.load %arg8[%c0_61, %c0_62, %c0_63] : memref<1x16x128xf32, #tpu.memory_space<vmem>>, vector<1x16x128xf32>
    %163 = vector.shape_cast %162 : vector<1x16x128xf32> to vector<16x128xf32>
    %164 = vector.shape_cast %161 : vector<16x128xf32> to vector<1x16x128xf32>
    tpu.vector_store %arg8[%c0_61, %c0_62, %c0_63], %164 {strides = array<i32>} : memref<1x16x128xf32, #tpu.memory_space<vmem>>, vector<1x16x128xf32>,
    return
  }
  func.func @transform_0(%arg0: i32, %arg1: i32) -> (i32, i32, i32) {
    %c0_i32 = arith.constant 0 : i32
    %c0_i32_0 = arith.constant 0 : i32
    return %arg0, %arg1, %c0_i32 : i32, i32, i32
  }
  func.func @transform_1(%arg0: i32, %arg1: i32) -> (i32, i32, i32) {
    %c0_i32 = arith.constant 0 : i32
    %c0_i32_0 = arith.constant 0 : i32
    %c0_i32_1 = arith.constant 0 : i32
    return %arg0, %c0_i32, %c0_i32_0 : i32, i32, i32
  }
  func.func @transform_2(%arg0: i32, %arg1: i32) -> (i32, i32, i32) {
    %c0_i32 = arith.constant 0 : i32
    %c0_i32_0 = arith.constant 0 : i32
    return %arg0, %arg1, %c0_i32 : i32, i32, i32
  }
  func.func @transform_3(%arg0: i32, %arg1: i32) -> (i32, i32, i32) {
    %c0_i32 = arith.constant 0 : i32
    %c0_i32_0 = arith.constant 0 : i32
    return %arg0, %arg1, %c0_i32 : i32, i32, i32
  }
  func.func @transform_4(%arg0: i32, %arg1: i32) -> (i32, i32, i32) {
    %c0_i32 = arith.constant 0 : i32
    %c0_i32_0 = arith.constant 0 : i32
    return %arg0, %arg1, %c0_i32 : i32, i32, i32
  }
  func.func @transform_5(%arg0: i32, %arg1: i32) -> (i32, i32) {
    %c0_i32 = arith.constant 0 : i32
    %c0_i32_0 = arith.constant 0 : i32
    %c0_i32_1 = arith.constant 0 : i32
    return %c0_i32, %c0_i32_0 : i32, i32
  }
  func.func @transform_6(%arg0: i32, %arg1: i32) -> (i32, i32, i32) {
    %c0_i32 = arith.constant 0 : i32
    %c0_i32_0 = arith.constant 0 : i32
    return %arg0, %arg1, %c0_i32 : i32, i32, i32
  }
}

</mosaic_0001>

<bundles_post_ra>
// kernel: tpu_custom_call.1
= control target key start
LH: loop header
LB: loop body
LE: loop exit
PB: predicated region body
PF: predicated region fallthrough
CT: control target
= control target key end

     0   :  { %s2175_s0 = inlined_call_operand.hbm [shape: f32[2,16,128], index: 0, kind: input, shape index: {}]   ;;  %s2176_s1 = inlined_call_operand.hbm [shape: bf16[2,128,128], index: 1, kind: input, shape index: {}]   ;;  %s2177_s2 = inlined_call_operand.hbm [shape: bf16[2,16,128], index: 2, kind: input, shape index: {}]   ;;  %s2178_s3 = inlined_call_operand.hbm [shape: s32[2,16,128], index: 3, kind: input, shape index: {}]   ;;  %s2179_s4 = inlined_call_operand.hbm [shape: f32[2,16,128], index: 4, kind: input, shape index: {}]   ;;  %s2180_s5 = inlined_call_operand.hbm [shape: f32[128,128], index: 5, kind: input, shape index: {}]   ;;  %s2181_s6 = inlined_call_operand.hbm [shape: f32[2,16,128], index: 6, kind: output, shape index: {}]  }
   0x1   :  { %2205 = sst [smem:[#allocation25_spill]] %s2175_s0 }
   0x2   :  { %2206 = sst [smem:[#allocation26_spill]] %s2176_s1 }
   0x3   :  { %2207 = sst [smem:[#allocation27_spill]] %s2178_s3 }
   0x4   :  { %2208 = sst [smem:[#allocation28_spill]] %s2181_s6 }
   0x5   :  { %11 = vsyncpa [#allocation3], 0 }
   0x6   :  { %13 = vsyncpa [#allocation3 + $0x1], 0 }
   0x7   :  { %14 = vsyncpa [#allocation6], 0 }
   0x8   :  { %16 = vsyncpa [#allocation6 + $0x1], 0 }
   0x9   :  { %17 = vsyncpa [#allocation9], 0 }
   0xa   :  { %19 = vsyncpa [#allocation9 + $0x1], 0 }
   0xb   :  { %20 = vsyncpa [#allocation12], 0 }
   0xc   :  { %21 = vsyncpa [#allocation4], 0 }
   0xd   :  { %23 = vsyncpa [#allocation4 + $0x1], 0  ;;  %s1656_s21 = smov 0   ;;  %s1658_s22 = smov 0  }
   0xe   :  { %s1660_s23 = smov 0   ;;  %s1662_s24 = smov 0  }
   0xf   :  { %s1664_s25 = smov 0   ;;  %s1666_s26 = smov 0  }
  0x10 LB: > { %2209 = sst [smem:[#allocation19_spill]] %s1584_s21  ;;  %s41_s27 = sadd.s32 1, %s1600_s25  ;;  %s1604_s26 = sphi %s1666_s26, %s29_s26   ;;  %s1600_s25 = sphi %s1664_s25, %s2252_s25   ;;  %s1596_s24 = sphi %s1662_s24, %s2251_s24   ;;  %s1592_s23 = sphi %s1660_s23, %s2247_s23   ;;  %s1588_s22 = sphi %s1658_s22, %s2250_s22   ;;  %s1584_s21 = sphi %s1656_s21, %s2249_s21  }
  0x11   : > { %2210 = sst [smem:[#allocation20_spill]] %s1592_s23  ;;  %s50_s28 = sadd.s32 1, %s1592_s23 }
  0x12   : > { %2211 = sst [smem:[#allocation21_spill]] %s1604_s26  ;;  %p43_p0 = scmp.ge.s32.totalorder %s41_s27, 2 }
  0x13   : > { %p2182_p1 = scmp.ne.s32.totalorder %s1592_s23, %s1588_s22  ;;  %p58_p2 = scmp.eq.s32.totalorder %s1604_s26, 0 }
  0x14   : > { %s2254_s27 = smov (%p43_p0, %s41_s27), 0  ;;  %p1256_p5 = scmp.lt.s32.totalorder %s1604_s26, 2 }
  0x15   : > { %2212 = sst [smem:[#allocation22_spill]] %s2254_s27  ;;  %p59_p4 = por %p58_p2, %p2182_p1 }
  0x16   : > { %s45_s29 = ssub.s32 %s1600_s25, %s2254_s27  ;;  %s1701_s30 = sand.u32 1, %s1592_s23  }
  0x17   : > { %p48_p6 = scmp.eq.s32.totalorder %s45_s29, 0  ;;  %p1703_p7 = pnand %p1256_p5, %p59_p4 }
  0x18   : > { %s282_s8 = sand.u32 1, %s1604_s26   ;;  %s1058_s9 = sshll.u32 %s1701_s30, 6 }
  0x19   : > { %s2213_s7 = scalar_select %p1703_p7, 1, 0 }
  0x1a   : > { %s1710_s10 = scalar_select %p48_p6, %s1592_s23, %s50_s28  }
  0x1b   : > { %s1092_s11 = sshll.u32 %s1600_s25, 10  ;;  %s2215_s1 = sld [smem:[#allocation26_spill]] }
  0x1c   : > { %2214 = sst [smem:[#allocation23_spill]] %s1710_s10  ;;  %s286_s15 = scalar_lea.vmem [#allocation5], %s1058_s9 }
  0x1d   : > { %s293_s16 = sshll.u32 %s286_s15, 4  ;;  %s1722_s17 = scalar_lea.sflag [#allocation6], %s282_s8  ;;  %s1718_s16 = int_to_ptr.vmem [resolvable:$true] %s293_s16 }
  0x1e   : > { %p1728_p9 = pneg %p1703_p7 }
  0x20   : > { %s2216_s19 = scalar_select %p1728_p9, 1, 0 }
  0x21   : > { %s1716_s14 = scalar_lea.hbm %s2215_s1, %s1092_s11  ;;  %s1337_s29 = scalar_lea.hbm %s2215_s1, 2048 }
  0x22   : > { %s1332_s18 = scalar_lea.hbm %s1716_s14, 1024  ;;  %p1338_p12 = scmp.lt.u32.totalorder %s1716_s14, %s2215_s1 }
  0x23   : > { %p1333_p8 = scmp.ne.s32.totalorder %s1716_s14, %s1332_s18  ;;  %p1339_p13 = scmp.lt.u32.totalorder %s1337_s29, %s1332_s18 }
  0x24   : > { %p1341_p2 = scmp.lt.u32.totalorder %s1332_s18, %s1716_s14 }
  0x25   : > { %p1335_p10 = pnand %p1728_p9, %p1333_p8  ;;  %p1340_p0 = por %p1339_p13, %p1338_p12 }
  0x27   : > { %p1336_p11 = pneg %p1335_p10  ;;  %p1342_p4 = por %p1341_p2, %p1340_p0 }
  0x29   : > { %p1343_p5 = pnand %p1342_p4, %p1336_p11 }
  0x2b   : > { %1346 = shalt.err (!%p1343_p5)
}
  0x2c   : > { %s1347_s12 = scalar_lea.vmem %s1718_s16, 1024  ;;  %s1606_s13 = smov [#allocation5]  }
  0x2d   : > { %p1348_p6 = scmp.ne.s32.totalorder %s1718_s16, %s1347_s12  ;;  %s1352_s15 = sshll.u32 %s1606_s13, 4  ;;  %s1353_s15 = int_to_ptr.vmem [resolvable:$false] %s1352_s15 }
  0x2e   : > { %s1354_s20 = scalar_lea.vmem %s1353_s15, 2048  ;;  %p1355_p3 = scmp.lt.s32.totalorder %s1718_s16, %s1353_s15 }
  0x2f   : > { %p1350_p8 = pnand %p1348_p6, %p1728_p9  ;;  %p1356_p1 = scmp.lt.s32.totalorder %s1354_s20, %s1347_s12 }
  0x31   : > { %p1351_p10 = pneg %p1350_p8  ;;  %p1357_p12 = por %p1356_p1, %p1355_p3 }
  0x33   : > { %p1358_p13 = pnand %p1357_p12, %p1351_p10 }
  0x35   : > { %1361 = shalt.err (!%p1358_p13)
}
  0x36   : > { %s2183_s18 = smov 64   ;;  %s2184_s28 = smov 4  }
  0x37   : > { %1241 = dma.hbm_to_vmem [thread:$0]  (!%p1703_p7), %s1716_s14, 1024, %s1718_s16, %s1722_s17, %s2183_s18, %s2183_s18, %s2184_s28  }
  0x38   : > { %s1756_s29 = sshll.u32 %s1701_s30, 4  ;;  %s1759_s9 = sshll.u32 %s1600_s25, 8 }
  0x39   : > { %s2217_s3 = sld [smem:[#allocation27_spill]]  ;;  %s330_s15 = scalar_lea.vmem [#allocation8], %s1756_s29 }
  0x3a   : > { %s339_s20 = sshll.u32 %s330_s15, 4  ;;  %s1772_s14 = scalar_lea.sflag [#allocation9], %s282_s8  ;;  %s1768_s20 = int_to_ptr.vmem [resolvable:$true] %s339_s20 }
  0x3f   : > { %s1765_s13 = scalar_lea.hbm %s2217_s3, %s1759_s9  ;;  %s1367_s12 = scalar_lea.hbm %s2217_s3, 512 }
  0x40   : > { %s1362_s16 = scalar_lea.hbm %s1765_s13, 256  ;;  %p1368_p0 = scmp.lt.u32.totalorder %s1765_s13, %s2217_s3 }
  0x41   : > { %p1363_p1 = scmp.ne.s32.totalorder %s1765_s13, %s1362_s16  ;;  %p1369_p2 = scmp.lt.u32.totalorder %s1367_s12, %s1362_s16 }
  0x42   : > { %p1371_p5 = scmp.lt.u32.totalorder %s1362_s16, %s1765_s13 }
  0x43   : > { %p1365_p3 = pnand %p1363_p1, %p1728_p9  ;;  %p1370_p4 = por %p1369_p2, %p1368_p0 }
  0x45   : > { %p1366_p11 = pneg %p1365_p3  ;;  %p1372_p6 = por %p1371_p5, %p1370_p4 }
  0x47   : > { %p1373_p8 = pnand %p1372_p6, %p1366_p11 }
  0x49   : > { %1376 = shalt.err (!%p1373_p8)
}
  0x4a   : > { %s1377_s8 = scalar_lea.vmem %s1768_s20, 256  ;;  %s1609_s18 = smov [#allocation8]  }
  0x4b   : > { %p1378_p10 = scmp.ne.s32.totalorder %s1768_s20, %s1377_s8  ;;  %s1382_s15 = sshll.u32 %s1609_s18, 4  ;;  %s1383_s15 = int_to_ptr.vmem [resolvable:$false] %s1382_s15 }
  0x4c   : > { %s1384_s1 = scalar_lea.vmem %s1383_s15, 512  ;;  %p1385_p1 = scmp.lt.s32.totalorder %s1768_s20, %s1383_s15 }
  0x4d   : > { %p1380_p12 = pnand %p1378_p10, %p1728_p9  ;;  %p1386_p3 = scmp.lt.s32.totalorder %s1384_s1, %s1377_s8 }
  0x4f   : > { %p1381_p13 = pneg %p1380_p12  ;;  %p1387_p0 = por %p1386_p3, %p1385_p1 }
  0x51   : > { %p1388_p2 = pnand %p1387_p0, %p1381_p13 }
  0x53   : > { %1391 = shalt.err (!%p1388_p2)
}
  0x54   : > { %s2185_s28 = smov 128   ;;  %s2187_s16 = smov 8  }
  0x55   : > { %1247 = dma.hbm_to_vmem [thread:$0]  (!%p1703_p7), %s1765_s13, 256, %s1768_s20, %s1772_s14, %s2185_s28, %s2185_s28, %s2187_s16  }
  0x56   : > { %s1800_s11 = sadd.s32 4294967295, %s1604_s26   ;;  %s1051_s12 = sadd.s32 4294967294, %s1604_s26  }
  0x57   : > { %p63_p11 = scmp.ne.s32.totalorder %s1588_s22, %s1584_s21  ;;  %p2195_p4 = scmp.eq.s32.totalorder %s1800_s11, 0 }
  0x58   : > { %p220_p5 = scmp.eq.s32.totalorder %s1800_s11, 1  ;;  %p226_p6 = scmp.eq.s32.totalorder %s1051_s12, 1 }
  0x59   : > { %p1809_p8 = por %p2195_p4, %p63_p11  ;;  %p1052_p10 = scmp.ge.s32.totalorder %s1604_s26, 1 }
  0x5a   : > { %p2219_p12 = scmp.ne.s32.totalorder %s1592_s23, %s1588_s22  ;;  %p1821_p1 = por %p226_p6, %p63_p11 }
  0x5b   : > { %s2218_s8 = scalar_select %p1809_p8, 1, 0 }
  0x5c   : > { %p1817_p13 = por %p220_p5, %p2219_p12  ;;  %p233_p3 = scmp.lt.s32.totalorder %s1604_s26, 3 }
  0x5d   : > { %s2221_s20 = scalar_select %p1821_p1, 1, 0 }
  0x5e   : > { %s2220_s13 = scalar_select %p1817_p13, 1, 0 }
  0x5f   : > { %2222 = sst [smem:[#allocation24_spill]] %s2221_s20  ;;  %p1826_p0 = pnand %p1052_p10, %p233_p3 }
  0x60   : > { %s1612_s15 = smov [#allocation11]   ;;  %s2224_s0 = sld [smem:[#allocation25_spill]] }
  0x61   : > { %s2223_s18 = scalar_select %p1826_p0, 1, 0 }
  0x62   : > { %s245_s1 = sshll.u32 %s1612_s15, 4  ;;  %p1231_p2 = pneg %p1826_p0  ;;  %s1830_s1 = int_to_ptr.vmem [resolvable:$true] %s245_s1 }
  0x63   : > { %s263_s3 = scalar_lea.vmem [#allocation2], %s1756_s29  ;;  %s260_s15 = scalar_lea.sflag [#allocation3], %s1701_s30 }
  0x64   : > { %s272_s27 = sshll.u32 %s263_s3, 4  ;;  %p1844_p11 = pnand %p1231_p2, %p2195_p4  ;;  %s1848_s27 = int_to_ptr.vmem [resolvable:$true] %s272_s27 }
  0x66   : > { %s1838_s16 = scalar_lea.hbm %s2224_s0, %s1759_s9  ;;  %s1397_s20 = scalar_lea.hbm %s2224_s0, 512 }
  0x67   : > { %s2225_s23 = scalar_select %p1844_p11, 1, 0 }
  0x68   : > { %s1392_s26 = scalar_lea.hbm %s1838_s16, 256  ;;  %p1398_p12 = scmp.lt.u32.totalorder %s1838_s16, %s2224_s0 }
  0x69   : > { %p1393_p5 = scmp.ne.s32.totalorder %s1838_s16, %s1392_s26  ;;  %p1399_p3 = scmp.lt.u32.totalorder %s1397_s20, %s1392_s26 }
  0x6a   : > { %p1401_p4 = scmp.lt.u32.totalorder %s1392_s26, %s1838_s16 }
  0x6b   : > { %p1395_p6 = pnand %p1393_p5, %p1728_p9  ;;  %p1400_p2 = por %p1399_p3, %p1398_p12 }
  0x6d   : > { %p1396_p10 = pneg %p1395_p6  ;;  %p1402_p1 = por %p1401_p4, %p1400_p2 }
  0x6f   : > { %p1403_p13 = pnand %p1402_p1, %p1396_p10 }
  0x71   : > { %1406 = shalt.err (!%p1403_p13)
}
  0x72   : > { %s1407_s10 = scalar_lea.vmem %s1848_s27, 256  ;;  %s1613_s28 = smov [#allocation2]  }
  0x73   : > { %p1408_p5 = scmp.ne.s32.totalorder %s1848_s27, %s1407_s10  ;;  %s1412_s12 = sshll.u32 %s1613_s28, 4  ;;  %s1413_s12 = int_to_ptr.vmem [resolvable:$false] %s1412_s12 }
  0x74   : > { %s1414_s21 = scalar_lea.vmem %s1413_s12, 512  ;;  %p1415_p0 = scmp.lt.s32.totalorder %s1848_s27, %s1413_s12 }
  0x75   : > { %p1410_p6 = pnand %p1408_p5, %p1728_p9  ;;  %p1416_p11 = scmp.lt.s32.totalorder %s1414_s21, %s1407_s10 }
  0x77   : > { %p1411_p8 = pneg %p1410_p6  ;;  %p1417_p12 = por %p1416_p11, %p1415_p0 }
  0x79   : > { %p1418_p3 = pnand %p1417_p12, %p1411_p8 }
  0x7b   : > { %1421 = shalt.err (!%p1418_p3)
}
  0x7c   : > { %s2226_s26 = smov 8   ;;  %s2227_s20 = smov 128  }
  0x7d   : > { %1238 = dma.hbm_to_vmem [thread:$0]  (!%p1703_p7), %s1838_s16, 256, %s1848_s27, %s260_s15, %s2227_s20, %s2227_s20, %s2226_s26  }
  0x7e   : > { %s1422_s0 = scalar_lea.hbm %s2180_s5, 2048  ;;  %p2228_p8 = scmp.ne.s32.totalorder %s2225_s23, 0 }
  0x7f   : > { %p1423_p4 = scmp.ne.s32.totalorder %s2180_s5, %s1422_s0  ;;  %p1429_p11 = scmp.lt.u32.totalorder %s1422_s0, %s2180_s5 }
  0x80   : > { %p1424_p13 = pneg %p2228_p8 }
  0x82   : > { %p1425_p1 = pnand %p1424_p13, %p1423_p4 }
  0x84   : > { %p1426_p0 = pneg %p1425_p1 }
  0x86   : > { %p1431_p10 = pnand %p1429_p11, %p1426_p0 }
  0x88   : > { %1434 = shalt.err (!%p1431_p10)
}
  0x89   : > { %s1435_s27 = scalar_lea.vmem %s1830_s1, 2048  ;;  %p1443_p12 = scmp.lt.s32.totalorder %s1830_s1, %s1830_s1 }
  0x8a   : > { %p1436_p2 = scmp.ne.s32.totalorder %s1830_s1, %s1435_s27  ;;  %p1444_p3 = scmp.lt.s32.totalorder %s1435_s27, %s1435_s27 }
  0x8c   : > { %p1438_p5 = pnand %p1436_p2, %p1424_p13  ;;  %p1445_p7 = por %p1444_p3, %p1443_p12 }
  0x8e   : > { %p1439_p6 = pneg %p1438_p5 }
  0x90   : > { %p1446_p9 = pnand %p1445_p7, %p1439_p6 }
  0x92   : > { %1449 = shalt.err (!%p1446_p9)
}
  0x93   : > { %1234 = dma.hbm_to_vmem [thread:$0]  (!%p2228_p8), %s2180_s5, 2048, %s1830_s1, [#allocation12], %s2227_s20, %s2227_s20, %s2226_s26  }
  0x94   : > { %s1093_s16 = sshll.u32 %s1600_s25, 7  ;;  %s2229_s15 = sshll.u32 %s1701_s30, 3 }
  0x95   : > { %s307_s3 = scalar_lea.vmem [#allocation7], %s2229_s15  ;;  %s1907_s21 = scalar_lea.hbm %s2177_s2, %s1093_s16 }
  0x96   : > { %s316_s28 = sshll.u32 %s307_s3, 4  ;;  %s1450_s23 = scalar_lea.hbm %s1907_s21, 128  ;;  %s1909_s28 = int_to_ptr.vmem [resolvable:$true] %s316_s28 }
  0x97   : > { %p1451_p7 = scmp.ne.s32.totalorder %s1907_s21, %s1450_s23  ;;  %p2230_p9 = scmp.ne.s32.totalorder %s2216_s19, 0 }
  0x98   : > { %s1455_s27 = scalar_lea.hbm %s2177_s2, 256  ;;  %p1456_p13 = scmp.lt.u32.totalorder %s1907_s21, %s2177_s2 }
  0x99   : > { %p1453_p4 = pnand %p1451_p7, %p2230_p9  ;;  %p1457_p1 = scmp.lt.u32.totalorder %s1455_s27, %s1450_s23 }
  0x9a   : > { %p1459_p11 = scmp.lt.u32.totalorder %s1450_s23, %s1907_s21 }
  0x9b   : > { %p1454_p8 = pneg %p1453_p4  ;;  %p1458_p0 = por %p1457_p1, %p1456_p13 }
  0x9d   : > { %p1460_p10 = por %p1459_p11, %p1458_p0 }
  0x9f   : > { %p1461_p2 = pnand %p1460_p10, %p1454_p8 }
  0xa1   : > { %1464 = shalt.err (!%p1461_p2)
}
  0xa2   : > { %s1465_s16 = scalar_lea.vmem %s1909_s28, 128  ;;  %s1614_s15 = smov [#allocation7]  }
  0xa3   : > { %p1466_p5 = scmp.ne.s32.totalorder %s1909_s28, %s1465_s16  ;;  %s1470_s3 = sshll.u32 %s1614_s15, 4  ;;  %s1471_s3 = int_to_ptr.vmem [resolvable:$false] %s1470_s3 }
  0xa4   : > { %s1472_s12 = scalar_lea.vmem %s1471_s3, 256  ;;  %p1473_p3 = scmp.lt.s32.totalorder %s1909_s28, %s1471_s3 }
  0xa5   : > { %p1468_p6 = pnand %p1466_p5, %p2230_p9  ;;  %p1474_p7 = scmp.lt.s32.totalorder %s1472_s12, %s1465_s16 }
  0xa7   : > { %p1469_p12 = pneg %p1468_p6  ;;  %p1475_p4 = por %p1474_p7, %p1473_p3 }
  0xa9   : > { %p1476_p13 = pnand %p1475_p4, %p1469_p12 }
  0xab   : > { %1479 = shalt.err (!%p1476_p13)
}
  0xac   : > { %p2231_p8 = scmp.ne.s32.totalorder %s2213_s7, 0  ;;  %s2232_s10 = smov 4  }
  0xad   : > { %s2233_s23 = smov 64   ;;  %s1940_s27 = scalar_lea.hbm %s2179_s4, %s1759_s9 }
  0xae   : > { %1244 = dma.hbm_to_vmem [thread:$0]  (!%p2231_p8), %s1907_s21, 128, %s1909_s28, %s1722_s17, %s2233_s23, %s2233_s23, %s2232_s10  }
  0xaf   : > { %s353_s0 = scalar_lea.vmem [#allocation10], %s1756_s29  ;;  %s1480_s16 = scalar_lea.hbm %s1940_s27, 256 }
  0xb0   : > { %s362_s6 = sshll.u32 %s353_s0, 4  ;;  %p1481_p1 = scmp.ne.s32.totalorder %s1940_s27, %s1480_s16  ;;  %s1943_s6 = int_to_ptr.vmem [resolvable:$true] %s362_s6 }
  0xb1   : > { %s1485_s28 = scalar_lea.hbm %s2179_s4, 512  ;;  %p1486_p10 = scmp.lt.u32.totalorder %s1940_s27, %s2179_s4 }
  0xb2   : > { %p1483_p0 = pnand %p1481_p1, %p2230_p9  ;;  %p1487_p2 = scmp.lt.u32.totalorder %s1485_s28, %s1480_s16 }
  0xb3   : > { %p1489_p6 = scmp.lt.u32.totalorder %s1480_s16, %s1940_s27 }
  0xb4   : > { %p1484_p11 = pneg %p1483_p0  ;;  %p1488_p5 = por %p1487_p2, %p1486_p10 }
  0xb6   : > { %p1490_p12 = por %p1489_p6, %p1488_p5 }
  0xb8   : > { %p1491_p3 = pnand %p1490_p12, %p1484_p11 }
  0xba   : > { %1494 = shalt.err (!%p1491_p3)
}
  0xbb   : > { %s1495_s29 = scalar_lea.vmem %s1943_s6, 256  ;;  %s1615_s3 = smov [#allocation10]  }
  0xbc   : > { %p1496_p7 = scmp.ne.s32.totalorder %s1943_s6, %s1495_s29  ;;  %s1500_s12 = sshll.u32 %s1615_s3, 4  ;;  %s1501_s12 = int_to_ptr.vmem [resolvable:$false] %s1500_s12 }
  0xbd   : > { %s1502_s10 = scalar_lea.vmem %s1501_s12, 512  ;;  %p1503_p1 = scmp.lt.s32.totalorder %s1943_s6, %s1501_s12 }
  0xbe   : > { %p1498_p4 = pnand %p1496_p7, %p2230_p9  ;;  %p1504_p0 = scmp.lt.s32.totalorder %s1502_s10, %s1495_s29 }
  0xc0   : > { %p1499_p13 = pneg %p1498_p4  ;;  %p1505_p10 = por %p1504_p0, %p1503_p1 }
  0xc2   : > { %p1506_p2 = pnand %p1505_p10, %p1499_p13 }
  0xc4   : > { %1509 = shalt.err (!%p1506_p2)
}
  0xc5   : > { %1250 = dma.hbm_to_vmem [thread:$0]  (!%p2231_p8), %s1940_s27, 256, %s1943_s6, %s1772_s14, %s2227_s20, %s2227_s20, %s2226_s26  }
  0xc6   : > { %p2234_p9 = scmp.ne.s32.totalorder %s2223_s18, 0 }
  0xc7   : > { %s1973_s19 = sand.u32 (!%p2234_p9), 1, %s1588_s22   ;;  %p2235_p11 = scmp.ne.s32.totalorder (!%p2234_p9), %s2218_s8, 0 }
  0xc8   : > { %374 = sbr.rel (%p2234_p9) target bundleno = 1043 (0x413), region = 44  ;;  %s1976_s23 = sshll.u32 (!%p2234_p9), %s1973_s19, 4 }
  0xc9   : > { %s377_s7 = scalar_lea.sflag (!%p2234_p9), [#allocation3], %s1973_s19  ;;  %s380_s1 = scalar_lea.vmem (!%p2234_p9), [#allocation2], %s1976_s23 }
  0xcf   : > { %1563 = dma.done.wait (%p2235_p11), %s377_s7, 256  }
  0xd0   : > { %1565 = vsyncadd (%p2235_p11), %s377_s7, 4294967040  ;;  %s385_s14 = sand.u32 1, %s1800_s11   ;;  %s1072_s18 = sshll.u32 %s1973_s19, 6 }
  0xd1   : > { %s386_s26 = scalar_lea.sflag [#allocation6], %s385_s14  ;;  %s1986_s20 = scalar_lea.vmem [#allocation5], %s1072_s18 }
  0xd2   : > { %1567 = dma.done.wait (%p2235_p11), %s386_s26, 1152  }
  0xd3   : > { %1569 = vsyncadd (%p2235_p11), %s386_s26, 4294966144  ;;  %s1073_s30 = sshll.u32 %s1973_s19, 3  ;;  %s404_s0 = scalar_lea.sflag [#allocation9], %s385_s14 }
  0xd4   : > { %s1993_s27 = scalar_lea.vmem [#allocation7], %s1073_s30  ;;  %s407_s6 = scalar_lea.vmem [#allocation8], %s1976_s23 }
  0xd5   : > { %1571 = dma.done.wait (%p2235_p11), %s404_s0, 512  }
  0xd6   : > { %1573 = vsyncadd (%p2235_p11), %s404_s0, 4294966784  ;;  %s416_s16 = scalar_lea.vmem [#allocation10], %s1976_s23  ;;  %p2236_p8 = scmp.eq.s32.totalorder %s1800_s11, 0 }
  0xd8   : > { %1575 = dma.done.wait (%p2236_p8), [#allocation12], 2048   ;;  %p2237_p5 = pmov %p2236_p8 }
  0xd9   : > { %v1616_v0 = vmov 0.0   ;;  %vm1617_vm0 = vmmov 0   ;;  %v1316_v1 = vld [vmem:[%s1986_s20] sm:$0xff]   ;;  %v1317_v2 = vld [vmem:[%s1986_s20 + $0x8] sm:$0xff]   ;;  %v1318_v3 = vld [vmem:[%s1986_s20 + $0x10] sm:$0xff]   ;;  %s468_s11 = scalar_lea.vmem [#allocation13], %s1976_s23 }
  0xda   : > { %1577 = vsyncadd (%p2237_p5), [#allocation12], 4294965248  ;;  %1128 = vmatprep.subr.bf16.mxu0 %v1616_v0  ;;  %1144 = vmatprep.mubr.msk.bf16.mxu0 %vm1617_vm0, %v1616_v0  ;;  %v1319_v4 = vld [vmem:[%s1986_s20 + $0x18] sm:$0xff]   ;;  %v1320_v5 = vld [vmem:[%s1986_s20 + $0x20] sm:$0xff]   ;;  %s858_s8 = sshll.u32 %s468_s11, 4  ;;  %s1096_s15 = sshll.u32 %s1596_s24, 8  ;;  %s2121_s8 = int_to_ptr.vmem [resolvable:$true] %s858_s8 }
  0xdb   : > { %1129 = vmatpush3.bf16.msra.mxu0 %v1316_v1  ;;  %v1321_v6 = vld [vmem:[%s1986_s20 + $0x28] sm:$0xff]   ;;  %v1322_v7 = vld [vmem:[%s1986_s20 + $0x30] sm:$0xff]   ;;  %v1323_v8 = vld [vmem:[%s1986_s20 + $0x38] sm:$0xff]   ;;  %s2238_s21 = sld [smem:[#allocation28_spill]]  ;;  %s843_s3 = scalar_lea.sflag [#allocation4], %s1973_s19 }
  0xdc   : > { %1130 = vmatprep.subr.bf16.mxu0 %v1616_v0  ;;  %v2015_v9 = vld [vmem:[%s380_s1] sm:$0xff]  ;;  %v2019_v10 = vld [vmem:[%s380_s1 + $0x8] sm:$0xff]  ;;  %v2026_v24 = vld [vmem:[%s407_s6] sm:$0xff]  ;;  %s1510_s12 = scalar_lea.vmem %s2121_s8, 256  ;;  %p2240_p12 = scmp.ne.s32.totalorder %s2220_s13, 0 }
  0xdd   : > { %v477_v11 = vpack.c.bf16 %v2019_v10, %v2015_v9  ;;  %v1098_v21 = vld [vmem:[%s1993_s27] sm:$0xff]   ;;  %vm611_vm1 = vcmp.eq.s32.totalorder %v2026_v24, 0  ;;  %vm637_vm2 = vcmp.eq.s32.totalorder %v2026_v24, 2  ;;  %vm624_vm3 = vcmp.eq.s32.totalorder %v2026_v24, 1  ;;  %v743_v46 = vld [vmem:[#allocation11] sm:$0xff]  ;;  %v744_v47 = vld [vmem:[#allocation11 + $0x8] sm:$0xff]  ;;  %p1511_p6 = scmp.ne.s32.totalorder %s2121_s8, %s1510_s12 }
  0xde   : > { %v1099_v23 = vunpack.c.l.bf16 %v1098_v21  ;;  %v1100_v29 = vunpack.c.h.bf16 %v1098_v21  ;;  %vm650_vm4 = vcmp.eq.s32.totalorder %v2026_v24, 3  ;;  %vm663_vm5 = vcmp.eq.s32.totalorder %v2026_v24, 4  ;;  %v2035_v32 = vld [vmem:[%s407_s6 + $0x8] sm:$0xff]  ;;  %v745_v51 = vld [vmem:[#allocation11 + $0x10] sm:$0xff]  ;;  %v747_v55 = vld [vmem:[#allocation11 + $0x20] sm:$0xff]  ;;  %s1618_s24 = smov [#allocation13]  }
  0xdf   : > { %1131 = vmatpush3.bf16.msra.mxu0 %v1317_v2  ;;  %vm676_vm6 = vcmp.eq.s32.totalorder %v2026_v24, 5  ;;  %vm625_vm7 = vcmp.eq.s32.totalorder %v2035_v32, 1  ;;  %vm638_vm8 = vcmp.eq.s32.totalorder %v2035_v32, 2  ;;  %vm612_vm9 = vcmp.eq.s32.totalorder %v2035_v32, 0  ;;  %v746_v52 = vld [vmem:[#allocation11 + $0x18] sm:$0xff]  ;;  %v748_v56 = vld [vmem:[#allocation11 + $0x28] sm:$0xff]  ;;  %p1512_p3 = pnand %p1511_p6, %p2240_p12 }
  0xe0   : > { %1132 = vmatprep.subr.bf16.mxu0 %v1616_v0  ;;  %vm651_vm10 = vcmp.eq.s32.totalorder %v2035_v32, 3  ;;  %vm689_vm11 = vcmp.eq.s32.totalorder %v2026_v24, 6  ;;  %vm664_vm12 = vcmp.eq.s32.totalorder %v2035_v32, 4  ;;  %vm702_vm13 = vcmp.eq.s32.totalorder %v2026_v24, 7  ;;  %v749_v59 = vld [vmem:[#allocation11 + $0x30] sm:$0xff]  ;;  %v750_v60 = vld [vmem:[#allocation11 + $0x38] sm:$0xff] }
  0xe1   : > { %vm677_vm14 = vcmp.eq.s32.totalorder %v2035_v32, 5  ;;  %vm715_vm15 = vcmp.eq.s32.totalorder %v2026_v24, 8  ;;  %vm690_vm0 = vcmp.eq.s32.totalorder %v2035_v32, 6  ;;  %v1183_v49 = vpack.c.bf16 %v744_v47, %v743_v46  ;;  %v751_v63 = vld [vmem:[#allocation11 + $0x40] sm:$0xff]  ;;  %v753_v2 = vld [vmem:[#allocation11 + $0x50] sm:$0xff]  ;;  %s2239_s9 = smov %s2238_s21  ;;  %s2126_s29 = scalar_lea.hbm %s2238_s21, %s1096_s15 }
  0xe2   : > { %v1187_v54 = vpack.c.bf16 %v746_v52, %v745_v51  ;;  %v1191_v58 = vpack.c.bf16 %v748_v56, %v747_v55  ;;  %v1195_v62 = vpack.c.bf16 %v750_v60, %v749_v59  ;;  %p1513_p7 = pneg %p1512_p3  ;;  %s1514_s10 = sshll.u32 %s1618_s24, 4  ;;  %s1515_s10 = int_to_ptr.vmem [resolvable:$false] %s1514_s10 }
  0xe3   : > { %1133 = vmatpush3.bf16.msra.mxu0 %v1318_v3  ;;  %1184 = vmatprep.subr.bf16.mxu1 %v1183_v49  ;;  %v754_v3 = vld [vmem:[#allocation11 + $0x58] sm:$0xff]  ;;  %s1516_s23 = scalar_lea.vmem %s1515_s10, 512  ;;  %p1517_p4 = scmp.lt.s32.totalorder %s2121_s8, %s1515_s10 }
  0xe4   : > { %1134 = vmatprep.subr.bf16.mxu0 %v1616_v0  ;;  %1186 = vmatpush3.bf16.msra.mxu1 %v1183_v49  ;;  %p1518_p13 = scmp.lt.s32.totalorder %s1516_s23, %s1510_s12 }
  0xe5   : > { %1188 = vmatprep.subr.bf16.mxu1 %v1187_v54 }
  0xe6   : > { %p1519_p1 = por %p1518_p13, %p1517_p4 }
  0xe7   : > { %1135 = vmatpush3.bf16.msra.mxu0 %v1319_v4  ;;  %v1203_v4 = vpack.c.bf16 %v754_v3, %v753_v2 }
  0xe8   : > { %1136 = vmatprep.subr.bf16.mxu0 %v1616_v0  ;;  %1190 = vmatpush3.bf16.msra.mxu1 %v1187_v54  ;;  %p1520_p0 = pnand %p1519_p1, %p1513_p7 }
  0xe9   : > { %1192 = vmatprep.subr.bf16.mxu1 %v1191_v58 }
  0xeb   : > { %1137 = vmatpush3.bf16.msra.mxu0 %v1320_v5  ;;  %v755_v5 = vld [vmem:[#allocation11 + $0x60] sm:$0xff] }
  0xec   : > { %1138 = vmatprep.subr.bf16.mxu0 %v1616_v0  ;;  %1194 = vmatpush3.bf16.msra.mxu1 %v1191_v58 }
  0xed   : > { %1196 = vmatprep.subr.bf16.mxu1 %v1195_v62 }
  0xef   : > { %1139 = vmatpush3.bf16.msra.mxu0 %v1321_v6  ;;  %v756_v6 = vld [vmem:[#allocation11 + $0x68] sm:$0xff] }
  0xf0   : > { %1140 = vmatprep.subr.bf16.mxu0 %v1616_v0  ;;  %1198 = vmatpush3.bf16.msra.mxu1 %v1195_v62 }
  0xf3   : > { %1141 = vmatpush3.bf16.msra.mxu0 %v1322_v7  ;;  %v1207_v7 = vpack.c.bf16 %v756_v6, %v755_v5 }
  0xf4   : > { %1142 = vmatprep.subr.bf16.mxu0 %v1616_v0  ;;  %v752_v0 = vld [vmem:[#allocation11 + $0x48] sm:$0xff] }
  0xf5   : > { %v1199_v1 = vpack.c.bf16 %v752_v0, %v751_v63 }
  0xf7   : > { %1143 = vmatpush3.bf16.msra.mxu0 %v1323_v8  ;;  %1200 = vmatprep.subr.bf16.mxu1 %v1199_v1  ;;  %v757_v8 = vld [vmem:[#allocation11 + $0x70] sm:$0xff] }
  0xf8   : > { %1202 = vmatpush3.bf16.msra.mxu1 %v1199_v1 }
  0xf9   : > { %1204 = vmatprep.subr.bf16.mxu1 %v1203_v4 }
  0xfa   : > { %1145 = vmatmul.mubr.bf16.vlgmr.msra.gmra.mrb[0].mxu0 %v477_v11  ;;  %v758_v11 = vld [vmem:[#allocation11 + $0x78] sm:$0xff] }
  0xfc   : > { %1206 = vmatpush3.bf16.msra.mxu1 %v1203_v4 }
  0xfd   : > { %1208 = vmatprep.subr.bf16.mxu1 %v1207_v7 }
 0x100   : > { %1210 = vmatpush3.bf16.msra.mxu1 %v1207_v7 }
 0x1cd   : > { %v576_v12 = vpop.f32.mrb[0].mxu0 }
 0x1ce   : > { %589 = vmax.xlane.f32.xlu0 %v576_v12  ;;  %v1146_v13 = vpop.f32.mrb[1].mxu0 }
 0x1cf   : > { %v579_v14 = vpop.f32.mrb[2].mxu0 }
 0x1d0   : > { %v1147_v15 = vpop.f32.mrb[3].mxu0 }
 0x1d1   : > { %v609_v15 = vlaneseq }
 0x1d2   : > { %591 = vmax.xlane.f32.xlu0 %v579_v14 }
 0x25b   : > { %v590_v16 = vpop.xlane.xlu0 %589 }
 0x25c   : > { %v593_v17 = vsub.f32 %v576_v12, %v590_v16  ;;  %v1211_v12 = vpack.c.bf16 %v758_v11, %v757_v8 }
 0x25e   : > { %v595_v18 = vmul.f32 1.442695, %v593_v17  ;;  %1212 = vmatprep.subr.bf16.mxu1 %v1211_v12 }
 0x25f   : > { %v592_v19 = vpop.xlane.xlu0 %591  ;;  %1214 = vmatpush3.bf16.msra.mxu1 %v1211_v12 }
 0x260   : > { %1324 = vpow2.f32 %v595_v18  ;;  %v594_v20 = vsub.f32 %v579_v14, %v592_v19  ;;  %v2065_v18 = vand.u32 127, %v609_v15 }
 0x262   : > { %v597_v22 = vmul.f32 1.442695, %v594_v20 }
 0x264   : > { %1326 = vpow2.f32 %v597_v22 }
 0x26a   : > { %v1325_v25 = vpop.eup %1324 }
 0x26b   : > { %v599_v26 = vmul.f32 %v1325_v25, %v1099_v23 }
 0x26d   : > { %601 = vadd.xlane.f32.xlu0 %v599_v26  ;;  %v613_v27 = vsel %vm611_vm1, %v599_v26, 0.0  ;;  %v639_v28 = vsel %vm637_vm2, %v599_v26, 0.0  ;;  %v626_v30 = vsel %vm624_vm3, %v599_v26, 0.0  ;;  %v652_v33 = vsel %vm650_vm4, %v599_v26, 0.0 }
 0x26e   : > { %615 = vadd.xlane.f32.xlu1 %v613_v27  ;;  %v1327_v31 = vpop.eup %1326  ;;  %v665_v35 = vsel %vm663_vm5, %v599_v26, 0.0  ;;  %v678_v36 = vsel %vm676_vm6, %v599_v26, 0.0  ;;  %v691_v41 = vsel %vm689_vm11, %v599_v26, 0.0  ;;  %v704_v43 = vsel %vm702_vm13, %v599_v26, 0.0 }
 0x26f   : > { %v2037_v34 = vmul.f32 %v1327_v31, %v1100_v29  ;;  %v717_v45 = vsel %vm715_vm15, %v599_v26, 0.0  ;;  %vm728_vm1 = vcmp.eq.s32.totalorder %v2026_v24, 9  ;;  %vm703_vm2 = vcmp.eq.s32.totalorder %v2035_v32, 7 }
 0x270   : > { %v730_v50 = vsel %vm728_vm1, %v599_v26, 0.0  ;;  %vm716_vm3 = vcmp.eq.s32.totalorder %v2035_v32, 8  ;;  %vm729_vm4 = vcmp.eq.s32.totalorder %v2035_v32, 9  ;;  %vm632_vm5 = vcmp.eq.s32.totalorder %v2065_v18, 1 }
 0x271   : > { %641 = vadd.xlane.f32.xlu0 %v639_v28  ;;  %v627_v37 = vsel %vm625_vm7, %v2037_v34, 0.0  ;;  %v640_v38 = vsel %vm638_vm8, %v2037_v34, 0.0  ;;  %v614_v39 = vsel %vm612_vm9, %v2037_v34, 0.0  ;;  %v653_v40 = vsel %vm651_vm10, %v2037_v34, 0.0 }
 0x272   : > { %628 = vadd.xlane.f32.xlu1 %v626_v30  ;;  %v666_v42 = vsel %vm664_vm12, %v2037_v34, 0.0  ;;  %v679_v44 = vsel %vm677_vm14, %v2037_v34, 0.0  ;;  %v692_v48 = vsel %vm690_vm0, %v2037_v34, 0.0  ;;  %v705_v53 = vsel %vm703_vm2, %v2037_v34, 0.0 }
 0x273   : > { %v718_v57 = vsel %vm716_vm3, %v2037_v34, 0.0  ;;  %v731_v61 = vsel %vm729_vm4, %v2037_v34, 0.0  ;;  %vm619_vm6 = vcmp.eq.s32.totalorder %v2065_v18, 0  ;;  %vm645_vm7 = vcmp.eq.s32.totalorder %v2065_v18, 2 }
 0x274   : > { %vm658_vm8 = vcmp.eq.s32.totalorder %v2065_v18, 3  ;;  %vm671_vm9 = vcmp.eq.s32.totalorder %v2065_v18, 4  ;;  %vm684_vm10 = vcmp.eq.s32.totalorder %v2065_v18, 5  ;;  %vm697_vm11 = vcmp.eq.s32.totalorder %v2065_v18, 6 }
 0x275   : > { %654 = vadd.xlane.f32.xlu0 %v652_v33  ;;  %vm710_vm12 = vcmp.eq.s32.totalorder %v2065_v18, 7  ;;  %vm723_vm13 = vcmp.eq.s32.totalorder %v2065_v18, 8  ;;  %vm736_vm14 = vcmp.eq.s32.totalorder %v2065_v18, 9 }
 0x276   : > { %667 = vadd.xlane.f32.xlu1 %v665_v35 }
 0x279   : > { %680 = vadd.xlane.f32.xlu0 %v678_v36 }
 0x27a   : > { %630 = vadd.xlane.f32.xlu1 %v627_v37 }
 0x27d   : > { %603 = vadd.xlane.f32.xlu0 %v2037_v34 }
 0x27e   : > { %643 = vadd.xlane.f32.xlu1 %v640_v38 }
 0x281   : > { %617 = vadd.xlane.f32.xlu0 %v614_v39 }
 0x282   : > { %656 = vadd.xlane.f32.xlu1 %v653_v40 }
 0x285   : > { %693 = vadd.xlane.f32.xlu0 %v691_v41 }
 0x286   : > { %669 = vadd.xlane.f32.xlu1 %v666_v42 }
 0x289   : > { %706 = vadd.xlane.f32.xlu0 %v704_v43 }
 0x28a   : > { %682 = vadd.xlane.f32.xlu1 %v679_v44 }
 0x28d   : > { %719 = vadd.xlane.f32.xlu0 %v717_v45 }
 0x28e   : > { %695 = vadd.xlane.f32.xlu1 %v692_v48 }
 0x291   : > { %732 = vadd.xlane.f32.xlu0 %v730_v50 }
 0x292   : > { %708 = vadd.xlane.f32.xlu1 %v705_v53 }
 0x296   : > { %721 = vadd.xlane.f32.xlu1 %v718_v57 }
 0x29a   : > { %734 = vadd.xlane.f32.xlu1 %v731_v61 }
 0x2fa   : > { %v602_v13 = vpop.xlane.xlu0 %601 }
 0x2fb   : > { %v616_v14 = vpop.xlane.xlu1 %615  ;;  %v605_v38 = vadd.f32 1e-10, %v602_v13 }
 0x2fc   : > { %v620_v23 = vsel %vm619_vm6, %v616_v14, 0.0 }
 0x2fd   : > { %1328 = vrcp.f32 %v605_v38 }
 0x2fe   : > { %v642_v16 = vpop.xlane.xlu0 %641 }
 0x2ff   : > { %v629_v17 = vpop.xlane.xlu1 %628  ;;  %v646_v27 = vsel %vm645_vm7, %v642_v16, 0.0 }
 0x300   : > { %v633_v21 = vsel %vm632_vm5, %v629_v17, 0.0 }
 0x301   : > { %v635_v25 = vadd.f32 %v633_v21, %v620_v23  ;;  %v834_v21 = vld [vmem:[%s416_s16] sm:$0xff] }
 0x302   : > { %v655_v19 = vpop.xlane.xlu0 %654  ;;  %v836_v23 = vadd.f32 %v834_v21, %v2015_v9 }
 0x303   : > { %v668_v20 = vpop.xlane.xlu1 %667  ;;  %v648_v29 = vadd.f32 %v646_v27, %v635_v25  ;;  %v659_v30 = vsel %vm658_vm8, %v655_v19, 0.0 }
 0x304   : > { %v672_v39 = vsel %vm671_vm9, %v668_v20, 0.0  ;;  %v835_v20 = vld [vmem:[%s416_s16 + $0x8] sm:$0xff] }
 0x305   : > { %v661_v34 = vadd.f32 %v659_v30, %v648_v29 }
 0x306   : > { %v681_v22 = vpop.xlane.xlu0 %680 }
 0x307   : > { %v631_v24 = vpop.xlane.xlu1 %630  ;;  %v674_v41 = vadd.f32 %v672_v39, %v661_v34  ;;  %v685_v43 = vsel %vm684_vm10, %v681_v22, 0.0  ;;  %v1329_v3 = vpop.eup %1328  ;;  %v837_v22 = vadd.f32 %v835_v20, %v2019_v10 }
 0x308   : > { %v634_v35 = vsel %vm632_vm5, %v631_v24, 0.0 }
 0x309   : > { %v687_v48 = vadd.f32 %v685_v43, %v674_v41 }
 0x30a   : > { %v604_v26 = vpop.xlane.xlu0 %603 }
 0x30b   : > { %v644_v28 = vpop.xlane.xlu1 %643  ;;  %v606_v57 = vadd.f32 1e-10, %v604_v26 }
 0x30c   : > { %v647_v42 = vsel %vm645_vm7, %v644_v28, 0.0 }
 0x30d   : > { %1330 = vrcp.f32 %v606_v57 }
 0x30e   : > { %v618_v31 = vpop.xlane.xlu0 %617 }
 0x30f   : > { %v621_v32 = vsel %vm619_vm6, %v618_v31, 0.0  ;;  %v657_v33 = vpop.xlane.xlu1 %656 }
 0x310   : > { %v636_v36 = vadd.f32 %v634_v35, %v621_v32  ;;  %v660_v49 = vsel %vm658_vm8, %v657_v33, 0.0 }
 0x312   : > { %v694_v37 = vpop.xlane.xlu0 %693  ;;  %v649_v44 = vadd.f32 %v647_v42, %v636_v36 }
 0x313   : > { %v670_v40 = vpop.xlane.xlu1 %669  ;;  %v698_v46 = vsel %vm697_vm11, %v694_v37, 0.0 }
 0x314   : > { %v662_v50 = vadd.f32 %v660_v49, %v649_v44  ;;  %v700_v52 = vadd.f32 %v698_v46, %v687_v48  ;;  %v673_v53 = vsel %vm671_vm9, %v670_v40, 0.0 }
 0x316   : > { %v707_v45 = vpop.xlane.xlu0 %706  ;;  %v675_v59 = vadd.f32 %v673_v53, %v662_v50 }
 0x317   : > { %v683_v47 = vpop.xlane.xlu1 %682  ;;  %v711_v51 = vsel %vm710_vm12, %v707_v45, 0.0  ;;  %v1331_v17 = vpop.eup %1330 }
 0x318   : > { %v713_v58 = vadd.f32 %v711_v51, %v700_v52  ;;  %v686_v60 = vsel %vm684_vm10, %v683_v47, 0.0 }
 0x319   : > { %v688_v4 = vadd.f32 %v686_v60, %v675_v59 }
 0x31a   : > { %v720_v54 = vpop.xlane.xlu0 %719 }
 0x31b   : > { %v724_v55 = vsel %vm723_vm13, %v720_v54, 0.0  ;;  %v696_v56 = vpop.xlane.xlu1 %695 }
 0x31c   : > { %v726_v61 = vadd.f32 %v724_v55, %v713_v58  ;;  %v699_v1 = vsel %vm697_vm11, %v696_v56, 0.0 }
 0x31d   : > { %v701_v7 = vadd.f32 %v699_v1, %v688_v4 }
 0x31e   : > { %v733_v62 = vpop.xlane.xlu0 %732 }
 0x31f   : > { %v737_v63 = vsel %vm736_vm14, %v733_v62, 0.0  ;;  %v709_v0 = vpop.xlane.xlu1 %708 }
 0x320   : > { %v739_v2 = vadd.f32 %v737_v63, %v726_v61  ;;  %v712_v5 = vsel %vm710_vm12, %v709_v0, 0.0 }
 0x321   : > { %v714_v12 = vadd.f32 %v712_v5, %v701_v7 }
 0x322   : > { %v741_v6 = vmul.f32 %v1329_v3, %v739_v2 }
 0x323   : > { %v722_v8 = vpop.xlane.xlu1 %721 }
 0x324   : > { %v725_v11 = vsel %vm723_vm13, %v722_v8, 0.0  ;;  %1180 = vmatprep.mubr.f32.mxu1 %v741_v6 }
 0x325   : > { %v727_v13 = vadd.f32 %v725_v11, %v714_v12 }
 0x327   : > { %v735_v14 = vpop.xlane.xlu1 %734 }
 0x328   : > { %v738_v15 = vsel %vm736_vm14, %v735_v14, 0.0 }
 0x329   : > { %v740_v16 = vadd.f32 %v738_v15, %v727_v13 }
 0x32b   : > { %v742_v19 = vmul.f32 %v1331_v17, %v740_v16 }
 0x32d   : > { %1181 = vmatmul.mubr.f32.vlgmr.msra.gmra.mrb[0].mxu1 %v742_v19 }
 0x400   : > { %v1182_v24 = vpop.f32.mrb[0].mxu1 }
 0x401   : > { %v839_v18 = vadd.f32 %v1182_v24, %v837_v22  ;;  %v825_v25 = vpop.f32.mrb[1].mxu1 }
 0x402   : > { %v838_v26 = vadd.f32 %v836_v23, %v825_v25 }
 0x403   : > { %841 = vst [vmem:[%s468_s11 + $0x8] sm:$0xff] %v839_v18 }
 0x404   : > { %840 = vst [vmem:[%s468_s11] sm:$0xff] %v838_v26 }
 0x405   : > { %1523 = shalt.err (!%p1520_p0)
}
 0x406   : > { %s1524_s7 = scalar_lea.hbm %s2126_s29, 256  ;;  %s1528_s18 = scalar_lea.hbm %s2239_s9, 512 }
 0x407   : > { %p1525_p10 = scmp.ne.s32.totalorder %s2126_s29, %s1524_s7  ;;  %p1529_p11 = scmp.lt.u32.totalorder %s2126_s29, %s2239_s9 }
 0x408   : > { %p1530_p8 = scmp.lt.u32.totalorder %s1528_s18, %s1524_s7  ;;  %p1532_p6 = scmp.lt.u32.totalorder %s1524_s7, %s2126_s29 }
 0x409   : > { %p1526_p2 = pnand %p1525_p10, %p2240_p12 }
 0x40a   : > { %p1531_p5 = por %p1530_p8, %p1529_p11 }
 0x40b   : > { %p1527_p9 = pneg %p1526_p2 }
 0x40c   : > { %p1533_p3 = por %p1532_p6, %p1531_p5 }
 0x40e   : > { %p1534_p7 = pnand %p1533_p3, %p1527_p9 }
 0x410   : > { %1537 = shalt.err (!%p1534_p7)
}
 0x411   : > { %s1619_s30 = smov 128   ;;  %s1620_s27 = smov 8  }
 0x412   : > { %1229 = dma.vmem_to_hbm [thread:$0]  (%p2240_p12), %s2121_s8, 256, %s2126_s29, %s843_s3, %s1619_s30, %s1619_s30, %s1620_s27  }
 0x413 PF: > { %s2241_s0 = sld [smem:[#allocation19_spill]]  ;;  %s2242_s6 = sld [smem:[#allocation24_spill]] }
 0x414   : > { %s2243_s16 = sld [smem:[#allocation21_spill]] }
 0x419   : > { %s873_s11 = sand.u32 1, %s2241_s0   ;;  %p2244_p4 = scmp.ne.s32.totalorder %s2242_s6, 0 }
 0x41a   : > { %p2245_p13 = scmp.ge.s32.totalorder %s2243_s16, 2  ;;  %s874_s15 = scalar_lea.sflag [#allocation4], %s873_s11 }
 0x41c   : > { %p1252_p1 = pnand %p2245_p13, %p2244_p4 }
 0x41e   : > { %1579 = dma.done.wait (!%p1252_p1), %s874_s15, 256  }
 0x41f   : > { %1581 = vsyncadd (!%p1252_p1), %s874_s15, 4294967040  ;;  %s29_s26 = sadd.s32 1, %s2243_s16   ;;  %s2246_s17 = sld [smem:[#allocation20_spill]] }
 0x420   : > { %p26_p0 = scmp.ge.s32.totalorder %s29_s26, 4   ;;  %s2247_s23 = sld [smem:[#allocation23_spill]] }
 0x421   : > { %s2248_s13 = sld [smem:[#allocation22_spill]]  ;;  %s2249_s21 = smov %s1588_s22 }
 0x422   : > { %s2251_s24 = smov %s1600_s25  ;;  %28 = sbr.rel (!%p26_p0) target bundleno = 16 (0x10), region = 141 }
 0x425   : > { %s2250_s22 = smov %s2246_s17 }
 0x427   : > { %s2252_s25 = smov %s2248_s13 }
 0x429   :  { %879 = vsyncpa [#allocation3], 1 }
 0x42a   :  { %881 = vsyncpa [#allocation3 + $0x1], 1 }
 0x42b   :  { %882 = vsyncpa [#allocation6], 1 }
 0x42c   :  { %884 = vsyncpa [#allocation6 + $0x1], 1 }
 0x42d   :  { %885 = vsyncpa [#allocation9], 1 }
 0x42e   :  { %887 = vsyncpa [#allocation9 + $0x1], 1 }
 0x42f   :  { %888 = vsyncpa [#allocation12], 1 }
 0x430   :  { %889 = vsyncpa [#allocation4], 1 }
 0x431   :  { %891 = vsyncpa [#allocation4 + $0x1], 1 }

</bundles_post_ra>
